<compile_context>
chip_gen: v6e
topology: v6e:2x2x1
jax: 0.10.0
libtpu: 0.0.40
codegen_flags: <defaults>
</compile_context>

<pallas_src>
import functools

import jax
import jax.numpy as jnp
from jax.experimental import pallas as pl
from jax.experimental.pallas import tpu as pltpu

LN_EPS = 1e-12


def _bert_embeddings_kernel(
        # scalar prefetch (SMEM)
        wids_smem,            # (B*S,) int32 token ids
        # inputs
        word_hbm,             # (V, H) word table, HBM-resident (pl.ANY)
        pos_ref,              # (TILE_S, H) position rows for this seq tile (VMEM)
        type_ref,             # (T, H) token-type table (VMEM)
        gamma_ref,            # (1, H)
        beta_ref,             # (1, H)
        tids_ref,             # (TILE_S, 1) int32 token-type ids
        # outputs
        out_ref,              # (TILE_S, H)
        # scratch
        wrows,                # VMEM (TILE_S, H): gathered word rows
        sem,                  # DMA semaphore shared by all row copies
        *, seq_len, tile_s, vocab_size):
    b = pl.program_id(0)
    st = pl.program_id(1)
    row0 = b * seq_len + st * tile_s        # first flattened token of this tile

    # 1) Kick off one DMA per token: gather its word-embedding row HBM -> VMEM.
    copies = []
    for i in range(tile_s):
        wid = wids_smem[row0 + i]
        wid = jnp.clip(wid, 0, vocab_size - 1)   # defined behavior for bad ids
        cp = pltpu.make_async_copy(word_hbm.at[pl.ds(wid, 1)],
                                   wrows.at[pl.ds(i, 1)],
                                   sem.at[0])
        cp.start()
        copies.append(cp)

    # 2) Position + token-type contributions (VPU work, overlaps the gather DMAs).
    n_types, _ = type_ref.shape
    x = pos_ref[...].astype(jnp.float32)                        # (TILE_S, H)
    tid = tids_ref[...]                                         # (TILE_S, 1) int32
    for t in range(n_types):                                    # tiny static loop (T == 2 for BERT)
        row = type_ref[pl.ds(t, 1), :].astype(jnp.float32)      # (1, H)
        x = x + jnp.where(tid == t, 1.0, 0.0) * row

    # 3) Wait for the gathered word rows and add them.
    for cp in copies:
        cp.wait()
    x = x + wrows[...].astype(jnp.float32)

    # 4) BertLayerNorm: mean / biased variance over hidden, eps = 1e-12.
    u = jnp.mean(x, axis=-1, keepdims=True)
    d = x - u
    var = jnp.mean(d * d, axis=-1, keepdims=True)
    y = gamma_ref[...] * (d * jax.lax.rsqrt(var + LN_EPS)) + beta_ref[...]

    # Dropout: identity in eval mode.
    out_ref[...] = y.astype(out_ref.dtype)


def bert_embeddings(input_ids, params, token_type_ids=None, tile_s=None):
    """input_ids: [B, S] int32.  Returns [B, S, H] float32."""
    B, S = input_ids.shape
    word_emb = params["word_embeddings"]        # [V, H]
    pos_emb = params["position_embeddings"]     # [P, H]
    type_emb = params["token_type_embeddings"]  # [T, H]
    gamma = params["ln_gamma"]                  # [H]
    beta = params["ln_beta"]                    # [H]
    V, H = word_emb.shape
    T = type_emb.shape[0]

    if token_type_ids is None:
        token_type_ids = jnp.zeros_like(input_ids)

    if tile_s is None:
        tile_s = S if S <= 64 else 64
    assert S % tile_s == 0, "sequence length must be divisible by the seq tile"
    assert tile_s == S or tile_s % 8 == 0
    n_s_tiles = S // tile_s
    N = B * S

    wids = input_ids.reshape(N).astype(jnp.int32)            # -> SMEM (drives DMA gather)
    tids = token_type_ids.reshape(N, 1).astype(jnp.int32)    # -> VMEM (vector select)

    kernel = functools.partial(_bert_embeddings_kernel,
                               seq_len=S, tile_s=tile_s, vocab_size=V)

    grid_spec = pltpu.PrefetchScalarGridSpec(
        num_scalar_prefetch=1,
        grid=(B, n_s_tiles),
        in_specs=[
            pl.BlockSpec(memory_space=pl.ANY),                                  # word table stays in HBM
            pl.BlockSpec((tile_s, H), lambda b, s, ids: (s, 0)),                # position rows of this seq tile
            pl.BlockSpec((T, H), lambda b, s, ids: (0, 0)),                     # tiny token-type table
            pl.BlockSpec((1, H), lambda b, s, ids: (0, 0)),                     # gamma
            pl.BlockSpec((1, H), lambda b, s, ids: (0, 0)),                     # beta
            pl.BlockSpec((tile_s, 1), lambda b, s, ids: (b * n_s_tiles + s, 0)),  # token-type ids
        ],
        out_specs=pl.BlockSpec((tile_s, H), lambda b, s, ids: (b * n_s_tiles + s, 0)),
        scratch_shapes=[
            pltpu.VMEM((tile_s, H), word_emb.dtype),   # gathered word rows
            pltpu.SemaphoreType.DMA((1,)),
        ],
    )

    out = pl.pallas_call(
        kernel,
        out_shape=jax.ShapeDtypeStruct((N, H), jnp.float32),
        grid_spec=grid_spec,
        compiler_params=pltpu.CompilerParams(
            dimension_semantics=("parallel", "parallel")),
        cost_estimate=pl.CostEstimate(
            flops=10 * N * H,                 # LN + adds
            transcendentals=N,                # rsqrt per row
            bytes_accessed=2 * N * H * 4 + N * 8),
    )(wids, word_emb, pos_emb, type_emb,
      gamma.reshape(1, H), beta.reshape(1, H), tids)

    return out.reshape(B, S, H)


def init_params(key, vocab_size, hidden_size, max_position_embeddings, type_vocab_size):
    k1, k2, k3 = jax.random.split(key, 3)
    std = 0.02
    return {
        "word_embeddings": std * jax.random.normal(k1, (vocab_size, hidden_size), jnp.float32),
        "position_embeddings": std * jax.random.normal(k2, (max_position_embeddings, hidden_size), jnp.float32),
        "token_type_embeddings": std * jax.random.normal(k3, (type_vocab_size, hidden_size), jnp.float32),
        "ln_gamma": jnp.ones((hidden_size,), jnp.float32),
        "ln_beta": jnp.zeros((hidden_size,), jnp.float32),
    }


if __name__ == "__main__":
    # Small BERT-like config
    vocab_size = 64
    hidden_size = 32
    max_position_embeddings = 16
    type_vocab_size = 2
    batch, seq = 2, 8

    key = jax.random.PRNGKey(0)
    pkey, ikey, tkey = jax.random.split(key, 3)

    params = init_params(pkey, vocab_size, hidden_size, max_position_embeddings, type_vocab_size)
    input_ids = jax.random.randint(ikey, (batch, seq), 0, vocab_size, dtype=jnp.int32)
    token_type_ids = jax.random.randint(tkey, (batch, seq), 0, type_vocab_size, dtype=jnp.int32)

    out = bert_embeddings(input_ids, params, token_type_ids)
    jax.block_until_ready(out)

    # Reference check in plain JAX (same math) for sanity.
    we = params["word_embeddings"][input_ids]
    pe = params["position_embeddings"][jnp.arange(seq)][None, :, :]
    te = params["token_type_embeddings"][token_type_ids]
    x = we + pe + te
    u = x.mean(-1, keepdims=True)
    s = ((x - u) ** 2).mean(-1, keepdims=True)
    ref = params["ln_gamma"] * ((x - u) / jnp.sqrt(s + LN_EPS)) + params["ln_beta"]
    assert out.shape == (batch, seq, hidden_size)
    assert jnp.allclose(out, ref, atol=1e-5, rtol=1e-5)

    print("KERNEL_OK")
</pallas_src>

<mosaic_0001>
module attributes {stable_mosaic.version = 11 : i64} {
  func.func @_bert_embeddings_kernel(%arg0: i32, %arg1: i32, %arg2: memref<16xi32, #tpu.memory_space<smem>>, %arg3: memref<64x32xf32, #tpu.memory_space<any>>, %arg4: memref<8x32xf32, #tpu.memory_space<vmem>>, %arg5: memref<2x32xf32, #tpu.memory_space<vmem>>, %arg6: memref<1x32xf32, #tpu.memory_space<vmem>>, %arg7: memref<1x32xf32, #tpu.memory_space<vmem>>, %arg8: memref<8x1xi32, #tpu.memory_space<vmem>>, %arg9: memref<8x32xf32, #tpu.memory_space<vmem>>, %arg10: memref<8x32xf32, #tpu.memory_space<vmem>>, %arg11: memref<1x!tpu.dma_semaphore, #tpu.memory_space<semaphore_mem>>) attributes {dimension_semantics = [#tpu.dimension_semantics<parallel>, #tpu.dimension_semantics<parallel>], iteration_bounds = array<i64: 2, 1>, scalar_prefetch = 1 : i64, scratch_operands = 2 : i64, tpu.core_type = #tpu.core_type<tc>, window_params = [{}, {transform_indices = @transform_1, window_bounds = array<i64: 8, 32>}, {pipeline_mode = #tpu.pipeline_mode<synchronous>, transform_indices = @transform_2, window_bounds = array<i64: 2, 32>}, {pipeline_mode = #tpu.pipeline_mode<synchronous>, transform_indices = @transform_3, window_bounds = array<i64: 1, 32>}, {pipeline_mode = #tpu.pipeline_mode<synchronous>, transform_indices = @transform_4, window_bounds = array<i64: 1, 32>}, {transform_indices = @transform_5, window_bounds = array<i64: 8, 1>}, {transform_indices = @transform_6, window_bounds = array<i64: 8, 32>}]} {
    %c8_i32 = arith.constant 8 : i32
    %0 = arith.muli %arg0, %c8_i32 : i32
    %c8_i32_0 = arith.constant 8 : i32
    %1 = arith.muli %arg1, %c8_i32_0 : i32
    %2 = arith.addi %0, %1 : i32
    %c0_i32 = arith.constant 0 : i32
    %3 = arith.addi %2, %c0_i32 : i32
    %4 = arith.index_cast %3 : i32 to index
    %5 = memref.load %arg2[%4] : memref<16xi32, #tpu.memory_space<smem>>
    %c0_i32_1 = arith.constant 0 : i32
    %c63_i32 = arith.constant 63 : i32
    %6 = arith.maxsi %c0_i32_1, %5 : i32
    %7 = arith.minsi %c63_i32, %6 : i32
    %c0_i32_2 = arith.constant 0 : i32
    %c0_i32_3 = arith.constant 0 : i32
    %8 = tpu.memref_slice %arg3[%7, %c0_i32_3] : memref<64x32xf32, #tpu.memory_space<any>> -> memref<1x32xf32, #tpu.memory_space<any>>
    %c0_i32_4 = arith.constant 0 : i32
    %c0_i32_5 = arith.constant 0 : i32
    %9 = tpu.memref_slice %arg10[%c0_i32_4, %c0_i32_5] : memref<8x32xf32, #tpu.memory_space<vmem>> -> memref<1x32xf32, #tpu.memory_space<vmem>>
    %10 = tpu.memref_slice %arg11[%c0_i32_2] : memref<1x!tpu.dma_semaphore, #tpu.memory_space<semaphore_mem>> -> memref<1x!tpu.dma_semaphore, #tpu.memory_space<semaphore_mem>>
    %11 = tpu.memref_squeeze %10 : memref<1x!tpu.dma_semaphore, #tpu.memory_space<semaphore_mem>> -> memref<!tpu.dma_semaphore, #tpu.memory_space<semaphore_mem>>
    tpu.enqueue_dma source(%8 : memref<1x32xf32, #tpu.memory_space<any>>) target(%9 : memref<1x32xf32, #tpu.memory_space<vmem>>) target_semaphore(%11 : memref<!tpu.dma_semaphore, #tpu.memory_space<semaphore_mem>>)
    %c1_i32 = arith.constant 1 : i32
    %12 = arith.addi %2, %c1_i32 : i32
    %13 = arith.index_cast %12 : i32 to index
    %14 = memref.load %arg2[%13] : memref<16xi32, #tpu.memory_space<smem>>
    %c0_i32_6 = arith.constant 0 : i32
    %c63_i32_7 = arith.constant 63 : i32
    %15 = arith.maxsi %c0_i32_6, %14 : i32
    %16 = arith.minsi %c63_i32_7, %15 : i32
    %c0_i32_8 = arith.constant 0 : i32
    %c0_i32_9 = arith.constant 0 : i32
    %17 = tpu.memref_slice %arg3[%16, %c0_i32_9] : memref<64x32xf32, #tpu.memory_space<any>> -> memref<1x32xf32, #tpu.memory_space<any>>
    %c1_i32_10 = arith.constant 1 : i32
    %c0_i32_11 = arith.constant 0 : i32
    %18 = tpu.memref_slice %arg10[%c1_i32_10, %c0_i32_11] : memref<8x32xf32, #tpu.memory_space<vmem>> -> memref<1x32xf32, #tpu.memory_space<vmem>>
    %19 = tpu.memref_slice %arg11[%c0_i32_8] : memref<1x!tpu.dma_semaphore, #tpu.memory_space<semaphore_mem>> -> memref<1x!tpu.dma_semaphore, #tpu.memory_space<semaphore_mem>>
    %20 = tpu.memref_squeeze %19 : memref<1x!tpu.dma_semaphore, #tpu.memory_space<semaphore_mem>> -> memref<!tpu.dma_semaphore, #tpu.memory_space<semaphore_mem>>
    tpu.enqueue_dma source(%17 : memref<1x32xf32, #tpu.memory_space<any>>) target(%18 : memref<1x32xf32, #tpu.memory_space<vmem>>) target_semaphore(%20 : memref<!tpu.dma_semaphore, #tpu.memory_space<semaphore_mem>>)
    %c2_i32 = arith.constant 2 : i32
    %21 = arith.addi %2, %c2_i32 : i32
    %22 = arith.index_cast %21 : i32 to index
    %23 = memref.load %arg2[%22] : memref<16xi32, #tpu.memory_space<smem>>
    %c0_i32_12 = arith.constant 0 : i32
    %c63_i32_13 = arith.constant 63 : i32
    %24 = arith.maxsi %c0_i32_12, %23 : i32
    %25 = arith.minsi %c63_i32_13, %24 : i32
    %c0_i32_14 = arith.constant 0 : i32
    %c0_i32_15 = arith.constant 0 : i32
    %26 = tpu.memref_slice %arg3[%25, %c0_i32_15] : memref<64x32xf32, #tpu.memory_space<any>> -> memref<1x32xf32, #tpu.memory_space<any>>
    %c2_i32_16 = arith.constant 2 : i32
    %c0_i32_17 = arith.constant 0 : i32
    %27 = tpu.memref_slice %arg10[%c2_i32_16, %c0_i32_17] : memref<8x32xf32, #tpu.memory_space<vmem>> -> memref<1x32xf32, #tpu.memory_space<vmem>>
    %28 = tpu.memref_slice %arg11[%c0_i32_14] : memref<1x!tpu.dma_semaphore, #tpu.memory_space<semaphore_mem>> -> memref<1x!tpu.dma_semaphore, #tpu.memory_space<semaphore_mem>>
    %29 = tpu.memref_squeeze %28 : memref<1x!tpu.dma_semaphore, #tpu.memory_space<semaphore_mem>> -> memref<!tpu.dma_semaphore, #tpu.memory_space<semaphore_mem>>
    tpu.enqueue_dma source(%26 : memref<1x32xf32, #tpu.memory_space<any>>) target(%27 : memref<1x32xf32, #tpu.memory_space<vmem>>) target_semaphore(%29 : memref<!tpu.dma_semaphore, #tpu.memory_space<semaphore_mem>>)
    %c3_i32 = arith.constant 3 : i32
    %30 = arith.addi %2, %c3_i32 : i32
    %31 = arith.index_cast %30 : i32 to index
    %32 = memref.load %arg2[%31] : memref<16xi32, #tpu.memory_space<smem>>
    %c0_i32_18 = arith.constant 0 : i32
    %c63_i32_19 = arith.constant 63 : i32
    %33 = arith.maxsi %c0_i32_18, %32 : i32
    %34 = arith.minsi %c63_i32_19, %33 : i32
    %c0_i32_20 = arith.constant 0 : i32
    %c0_i32_21 = arith.constant 0 : i32
    %35 = tpu.memref_slice %arg3[%34, %c0_i32_21] : memref<64x32xf32, #tpu.memory_space<any>> -> memref<1x32xf32, #tpu.memory_space<any>>
    %c3_i32_22 = arith.constant 3 : i32
    %c0_i32_23 = arith.constant 0 : i32
    %36 = tpu.memref_slice %arg10[%c3_i32_22, %c0_i32_23] : memref<8x32xf32, #tpu.memory_space<vmem>> -> memref<1x32xf32, #tpu.memory_space<vmem>>
    %37 = tpu.memref_slice %arg11[%c0_i32_20] : memref<1x!tpu.dma_semaphore, #tpu.memory_space<semaphore_mem>> -> memref<1x!tpu.dma_semaphore, #tpu.memory_space<semaphore_mem>>
    %38 = tpu.memref_squeeze %37 : memref<1x!tpu.dma_semaphore, #tpu.memory_space<semaphore_mem>> -> memref<!tpu.dma_semaphore, #tpu.memory_space<semaphore_mem>>
    tpu.enqueue_dma source(%35 : memref<1x32xf32, #tpu.memory_space<any>>) target(%36 : memref<1x32xf32, #tpu.memory_space<vmem>>) target_semaphore(%38 : memref<!tpu.dma_semaphore, #tpu.memory_space<semaphore_mem>>)
    %c4_i32 = arith.constant 4 : i32
    %39 = arith.addi %2, %c4_i32 : i32
    %40 = arith.index_cast %39 : i32 to index
    %41 = memref.load %arg2[%40] : memref<16xi32, #tpu.memory_space<smem>>
    %c0_i32_24 = arith.constant 0 : i32
    %c63_i32_25 = arith.constant 63 : i32
    %42 = arith.maxsi %c0_i32_24, %41 : i32
    %43 = arith.minsi %c63_i32_25, %42 : i32
    %c0_i32_26 = arith.constant 0 : i32
    %c0_i32_27 = arith.constant 0 : i32
    %44 = tpu.memref_slice %arg3[%43, %c0_i32_27] : memref<64x32xf32, #tpu.memory_space<any>> -> memref<1x32xf32, #tpu.memory_space<any>>
    %c4_i32_28 = arith.constant 4 : i32
    %c0_i32_29 = arith.constant 0 : i32
    %45 = tpu.memref_slice %arg10[%c4_i32_28, %c0_i32_29] : memref<8x32xf32, #tpu.memory_space<vmem>> -> memref<1x32xf32, #tpu.memory_space<vmem>>
    %46 = tpu.memref_slice %arg11[%c0_i32_26] : memref<1x!tpu.dma_semaphore, #tpu.memory_space<semaphore_mem>> -> memref<1x!tpu.dma_semaphore, #tpu.memory_space<semaphore_mem>>
    %47 = tpu.memref_squeeze %46 : memref<1x!tpu.dma_semaphore, #tpu.memory_space<semaphore_mem>> -> memref<!tpu.dma_semaphore, #tpu.memory_space<semaphore_mem>>
    tpu.enqueue_dma source(%44 : memref<1x32xf32, #tpu.memory_space<any>>) target(%45 : memref<1x32xf32, #tpu.memory_space<vmem>>) target_semaphore(%47 : memref<!tpu.dma_semaphore, #tpu.memory_space<semaphore_mem>>)
    %c5_i32 = arith.constant 5 : i32
    %48 = arith.addi %2, %c5_i32 : i32
    %49 = arith.index_cast %48 : i32 to index
    %50 = memref.load %arg2[%49] : memref<16xi32, #tpu.memory_space<smem>>
    %c0_i32_30 = arith.constant 0 : i32
    %c63_i32_31 = arith.constant 63 : i32
    %51 = arith.maxsi %c0_i32_30, %50 : i32
    %52 = arith.minsi %c63_i32_31, %51 : i32
    %c0_i32_32 = arith.constant 0 : i32
    %c0_i32_33 = arith.constant 0 : i32
    %53 = tpu.memref_slice %arg3[%52, %c0_i32_33] : memref<64x32xf32, #tpu.memory_space<any>> -> memref<1x32xf32, #tpu.memory_space<any>>
    %c5_i32_34 = arith.constant 5 : i32
    %c0_i32_35 = arith.constant 0 : i32
    %54 = tpu.memref_slice %arg10[%c5_i32_34, %c0_i32_35] : memref<8x32xf32, #tpu.memory_space<vmem>> -> memref<1x32xf32, #tpu.memory_space<vmem>>
    %55 = tpu.memref_slice %arg11[%c0_i32_32] : memref<1x!tpu.dma_semaphore, #tpu.memory_space<semaphore_mem>> -> memref<1x!tpu.dma_semaphore, #tpu.memory_space<semaphore_mem>>
    %56 = tpu.memref_squeeze %55 : memref<1x!tpu.dma_semaphore, #tpu.memory_space<semaphore_mem>> -> memref<!tpu.dma_semaphore, #tpu.memory_space<semaphore_mem>>
    tpu.enqueue_dma source(%53 : memref<1x32xf32, #tpu.memory_space<any>>) target(%54 : memref<1x32xf32, #tpu.memory_space<vmem>>) target_semaphore(%56 : memref<!tpu.dma_semaphore, #tpu.memory_space<semaphore_mem>>)
    %c6_i32 = arith.constant 6 : i32
    %57 = arith.addi %2, %c6_i32 : i32
    %58 = arith.index_cast %57 : i32 to index
    %59 = memref.load %arg2[%58] : memref<16xi32, #tpu.memory_space<smem>>
    %c0_i32_36 = arith.constant 0 : i32
    %c63_i32_37 = arith.constant 63 : i32
    %60 = arith.maxsi %c0_i32_36, %59 : i32
    %61 = arith.minsi %c63_i32_37, %60 : i32
    %c0_i32_38 = arith.constant 0 : i32
    %c0_i32_39 = arith.constant 0 : i32
    %62 = tpu.memref_slice %arg3[%61, %c0_i32_39] : memref<64x32xf32, #tpu.memory_space<any>> -> memref<1x32xf32, #tpu.memory_space<any>>
    %c6_i32_40 = arith.constant 6 : i32
    %c0_i32_41 = arith.constant 0 : i32
    %63 = tpu.memref_slice %arg10[%c6_i32_40, %c0_i32_41] : memref<8x32xf32, #tpu.memory_space<vmem>> -> memref<1x32xf32, #tpu.memory_space<vmem>>
    %64 = tpu.memref_slice %arg11[%c0_i32_38] : memref<1x!tpu.dma_semaphore, #tpu.memory_space<semaphore_mem>> -> memref<1x!tpu.dma_semaphore, #tpu.memory_space<semaphore_mem>>
    %65 = tpu.memref_squeeze %64 : memref<1x!tpu.dma_semaphore, #tpu.memory_space<semaphore_mem>> -> memref<!tpu.dma_semaphore, #tpu.memory_space<semaphore_mem>>
    tpu.enqueue_dma source(%62 : memref<1x32xf32, #tpu.memory_space<any>>) target(%63 : memref<1x32xf32, #tpu.memory_space<vmem>>) target_semaphore(%65 : memref<!tpu.dma_semaphore, #tpu.memory_space<semaphore_mem>>)
    %c7_i32 = arith.constant 7 : i32
    %66 = arith.addi %2, %c7_i32 : i32
    %67 = arith.index_cast %66 : i32 to index
    %68 = memref.load %arg2[%67] : memref<16xi32, #tpu.memory_space<smem>>
    %c0_i32_42 = arith.constant 0 : i32
    %c63_i32_43 = arith.constant 63 : i32
    %69 = arith.maxsi %c0_i32_42, %68 : i32
    %70 = arith.minsi %c63_i32_43, %69 : i32
    %c0_i32_44 = arith.constant 0 : i32
    %c0_i32_45 = arith.constant 0 : i32
    %71 = tpu.memref_slice %arg3[%70, %c0_i32_45] : memref<64x32xf32, #tpu.memory_space<any>> -> memref<1x32xf32, #tpu.memory_space<any>>
    %c7_i32_46 = arith.constant 7 : i32
    %c0_i32_47 = arith.constant 0 : i32
    %72 = tpu.memref_slice %arg10[%c7_i32_46, %c0_i32_47] : memref<8x32xf32, #tpu.memory_space<vmem>> -> memref<1x32xf32, #tpu.memory_space<vmem>>
    %73 = tpu.memref_slice %arg11[%c0_i32_44] : memref<1x!tpu.dma_semaphore, #tpu.memory_space<semaphore_mem>> -> memref<1x!tpu.dma_semaphore, #tpu.memory_space<semaphore_mem>>
    %74 = tpu.memref_squeeze %73 : memref<1x!tpu.dma_semaphore, #tpu.memory_space<semaphore_mem>> -> memref<!tpu.dma_semaphore, #tpu.memory_space<semaphore_mem>>
    tpu.enqueue_dma source(%71 : memref<1x32xf32, #tpu.memory_space<any>>) target(%72 : memref<1x32xf32, #tpu.memory_space<vmem>>) target_semaphore(%74 : memref<!tpu.dma_semaphore, #tpu.memory_space<semaphore_mem>>)
    %c0 = arith.constant 0 : index
    %c0_48 = arith.constant 0 : index
    %75 = vector.load %arg4[%c0, %c0_48] : memref<8x32xf32, #tpu.memory_space<vmem>>, vector<8x32xf32>
    %c0_49 = arith.constant 0 : index
    %c0_50 = arith.constant 0 : index
    %76 = vector.load %arg8[%c0_49, %c0_50] : memref<8x1xi32, #tpu.memory_space<vmem>>, vector<8x1xi32>
    %c0_51 = arith.constant 0 : index
    %c0_52 = arith.constant 0 : index
    %77 = vector.load %arg5[%c0_51, %c0_52] : memref<2x32xf32, #tpu.memory_space<vmem>>, vector<1x32xf32>
    %c0_i32_53 = arith.constant 0 : i32
    %78 = vector.broadcast %c0_i32_53 : i32 to vector<8x1xi32>
    %79 = arith.cmpi eq, %76, %78 : vector<8x1xi32>
    %cst = arith.constant 1.000000e+00 : f32
    %cst_54 = arith.constant 0.000000e+00 : f32
    %80 = vector.broadcast %cst : f32 to vector<8x1xf32>
    %81 = vector.broadcast %cst_54 : f32 to vector<8x1xf32>
    %82 = arith.select %79, %80, %81 : vector<8x1xi1>, vector<8x1xf32>
    %83 = vector.broadcast %82 : vector<8x1xf32> to vector<8x32xf32>
    %84 = vector.broadcast %77 : vector<1x32xf32> to vector<8x32xf32>
    %85 = arith.mulf %83, %84 : vector<8x32xf32>
    %86 = arith.addf %75, %85 : vector<8x32xf32>
    %c1 = arith.constant 1 : index
    %c0_55 = arith.constant 0 : index
    %87 = vector.load %arg5[%c1, %c0_55] : memref<2x32xf32, #tpu.memory_space<vmem>>, vector<1x32xf32>
    %c1_i32_56 = arith.constant 1 : i32
    %88 = vector.broadcast %c1_i32_56 : i32 to vector<8x1xi32>
    %89 = arith.cmpi eq, %76, %88 : vector<8x1xi32>
    %cst_57 = arith.constant 1.000000e+00 : f32
    %cst_58 = arith.constant 0.000000e+00 : f32
    %90 = vector.broadcast %cst_57 : f32 to vector<8x1xf32>
    %91 = vector.broadcast %cst_58 : f32 to vector<8x1xf32>
    %92 = arith.select %89, %90, %91 : vector<8x1xi1>, vector<8x1xf32>
    %93 = vector.broadcast %92 : vector<8x1xf32> to vector<8x32xf32>
    %94 = vector.broadcast %87 : vector<1x32xf32> to vector<8x32xf32>
    %95 = arith.mulf %93, %94 : vector<8x32xf32>
    %96 = arith.addf %86, %95 : vector<8x32xf32>
    %c0_i32_59 = arith.constant 0 : i32
    %c0_i32_60 = arith.constant 0 : i32
    %97 = tpu.memref_slice %arg3[%7, %c0_i32_60] : memref<64x32xf32, #tpu.memory_space<any>> -> memref<1x32xf32, #tpu.memory_space<any>>
    %c0_i32_61 = arith.constant 0 : i32
    %c0_i32_62 = arith.constant 0 : i32
    %98 = tpu.memref_slice %arg10[%c0_i32_61, %c0_i32_62] : memref<8x32xf32, #tpu.memory_space<vmem>> -> memref<1x32xf32, #tpu.memory_space<vmem>>
    %99 = tpu.memref_slice %arg11[%c0_i32_59] : memref<1x!tpu.dma_semaphore, #tpu.memory_space<semaphore_mem>> -> memref<1x!tpu.dma_semaphore, #tpu.memory_space<semaphore_mem>>
    %100 = tpu.memref_squeeze %99 : memref<1x!tpu.dma_semaphore, #tpu.memory_space<semaphore_mem>> -> memref<!tpu.dma_semaphore, #tpu.memory_space<semaphore_mem>>
    tpu.wait_dma2 semaphore(%100 : memref<!tpu.dma_semaphore, #tpu.memory_space<semaphore_mem>>) src(%97 : memref<1x32xf32, #tpu.memory_space<any>>) dst(%98 : memref<1x32xf32, #tpu.memory_space<vmem>>)
    %c0_i32_63 = arith.constant 0 : i32
    %c0_i32_64 = arith.constant 0 : i32
    %101 = tpu.memref_slice %arg3[%16, %c0_i32_64] : memref<64x32xf32, #tpu.memory_space<any>> -> memref<1x32xf32, #tpu.memory_space<any>>
    %c1_i32_65 = arith.constant 1 : i32
    %c0_i32_66 = arith.constant 0 : i32
    %102 = tpu.memref_slice %arg10[%c1_i32_65, %c0_i32_66] : memref<8x32xf32, #tpu.memory_space<vmem>> -> memref<1x32xf32, #tpu.memory_space<vmem>>
    %103 = tpu.memref_slice %arg11[%c0_i32_63] : memref<1x!tpu.dma_semaphore, #tpu.memory_space<semaphore_mem>> -> memref<1x!tpu.dma_semaphore, #tpu.memory_space<semaphore_mem>>
    %104 = tpu.memref_squeeze %103 : memref<1x!tpu.dma_semaphore, #tpu.memory_space<semaphore_mem>> -> memref<!tpu.dma_semaphore, #tpu.memory_space<semaphore_mem>>
    tpu.wait_dma2 semaphore(%104 : memref<!tpu.dma_semaphore, #tpu.memory_space<semaphore_mem>>) src(%101 : memref<1x32xf32, #tpu.memory_space<any>>) dst(%102 : memref<1x32xf32, #tpu.memory_space<vmem>>)
    %c0_i32_67 = arith.constant 0 : i32
    %c0_i32_68 = arith.constant 0 : i32
    %105 = tpu.memref_slice %arg3[%25, %c0_i32_68] : memref<64x32xf32, #tpu.memory_space<any>> -> memref<1x32xf32, #tpu.memory_space<any>>
    %c2_i32_69 = arith.constant 2 : i32
    %c0_i32_70 = arith.constant 0 : i32
    %106 = tpu.memref_slice %arg10[%c2_i32_69, %c0_i32_70] : memref<8x32xf32, #tpu.memory_space<vmem>> -> memref<1x32xf32, #tpu.memory_space<vmem>>
    %107 = tpu.memref_slice %arg11[%c0_i32_67] : memref<1x!tpu.dma_semaphore, #tpu.memory_space<semaphore_mem>> -> memref<1x!tpu.dma_semaphore, #tpu.memory_space<semaphore_mem>>
    %108 = tpu.memref_squeeze %107 : memref<1x!tpu.dma_semaphore, #tpu.memory_space<semaphore_mem>> -> memref<!tpu.dma_semaphore, #tpu.memory_space<semaphore_mem>>
    tpu.wait_dma2 semaphore(%108 : memref<!tpu.dma_semaphore, #tpu.memory_space<semaphore_mem>>) src(%105 : memref<1x32xf32, #tpu.memory_space<any>>) dst(%106 : memref<1x32xf32, #tpu.memory_space<vmem>>)
    %c0_i32_71 = arith.constant 0 : i32
    %c0_i32_72 = arith.constant 0 : i32
    %109 = tpu.memref_slice %arg3[%34, %c0_i32_72] : memref<64x32xf32, #tpu.memory_space<any>> -> memref<1x32xf32, #tpu.memory_space<any>>
    %c3_i32_73 = arith.constant 3 : i32
    %c0_i32_74 = arith.constant 0 : i32
    %110 = tpu.memref_slice %arg10[%c3_i32_73, %c0_i32_74] : memref<8x32xf32, #tpu.memory_space<vmem>> -> memref<1x32xf32, #tpu.memory_space<vmem>>
    %111 = tpu.memref_slice %arg11[%c0_i32_71] : memref<1x!tpu.dma_semaphore, #tpu.memory_space<semaphore_mem>> -> memref<1x!tpu.dma_semaphore, #tpu.memory_space<semaphore_mem>>
    %112 = tpu.memref_squeeze %111 : memref<1x!tpu.dma_semaphore, #tpu.memory_space<semaphore_mem>> -> memref<!tpu.dma_semaphore, #tpu.memory_space<semaphore_mem>>
    tpu.wait_dma2 semaphore(%112 : memref<!tpu.dma_semaphore, #tpu.memory_space<semaphore_mem>>) src(%109 : memref<1x32xf32, #tpu.memory_space<any>>) dst(%110 : memref<1x32xf32, #tpu.memory_space<vmem>>)
    %c0_i32_75 = arith.constant 0 : i32
    %c0_i32_76 = arith.constant 0 : i32
    %113 = tpu.memref_slice %arg3[%43, %c0_i32_76] : memref<64x32xf32, #tpu.memory_space<any>> -> memref<1x32xf32, #tpu.memory_space<any>>
    %c4_i32_77 = arith.constant 4 : i32
    %c0_i32_78 = arith.constant 0 : i32
    %114 = tpu.memref_slice %arg10[%c4_i32_77, %c0_i32_78] : memref<8x32xf32, #tpu.memory_space<vmem>> -> memref<1x32xf32, #tpu.memory_space<vmem>>
    %115 = tpu.memref_slice %arg11[%c0_i32_75] : memref<1x!tpu.dma_semaphore, #tpu.memory_space<semaphore_mem>> -> memref<1x!tpu.dma_semaphore, #tpu.memory_space<semaphore_mem>>
    %116 = tpu.memref_squeeze %115 : memref<1x!tpu.dma_semaphore, #tpu.memory_space<semaphore_mem>> -> memref<!tpu.dma_semaphore, #tpu.memory_space<semaphore_mem>>
    tpu.wait_dma2 semaphore(%116 : memref<!tpu.dma_semaphore, #tpu.memory_space<semaphore_mem>>) src(%113 : memref<1x32xf32, #tpu.memory_space<any>>) dst(%114 : memref<1x32xf32, #tpu.memory_space<vmem>>)
    %c0_i32_79 = arith.constant 0 : i32
    %c0_i32_80 = arith.constant 0 : i32
    %117 = tpu.memref_slice %arg3[%52, %c0_i32_80] : memref<64x32xf32, #tpu.memory_space<any>> -> memref<1x32xf32, #tpu.memory_space<any>>
    %c5_i32_81 = arith.constant 5 : i32
    %c0_i32_82 = arith.constant 0 : i32
    %118 = tpu.memref_slice %arg10[%c5_i32_81, %c0_i32_82] : memref<8x32xf32, #tpu.memory_space<vmem>> -> memref<1x32xf32, #tpu.memory_space<vmem>>
    %119 = tpu.memref_slice %arg11[%c0_i32_79] : memref<1x!tpu.dma_semaphore, #tpu.memory_space<semaphore_mem>> -> memref<1x!tpu.dma_semaphore, #tpu.memory_space<semaphore_mem>>
    %120 = tpu.memref_squeeze %119 : memref<1x!tpu.dma_semaphore, #tpu.memory_space<semaphore_mem>> -> memref<!tpu.dma_semaphore, #tpu.memory_space<semaphore_mem>>
    tpu.wait_dma2 semaphore(%120 : memref<!tpu.dma_semaphore, #tpu.memory_space<semaphore_mem>>) src(%117 : memref<1x32xf32, #tpu.memory_space<any>>) dst(%118 : memref<1x32xf32, #tpu.memory_space<vmem>>)
    %c0_i32_83 = arith.constant 0 : i32
    %c0_i32_84 = arith.constant 0 : i32
    %121 = tpu.memref_slice %arg3[%61, %c0_i32_84] : memref<64x32xf32, #tpu.memory_space<any>> -> memref<1x32xf32, #tpu.memory_space<any>>
    %c6_i32_85 = arith.constant 6 : i32
    %c0_i32_86 = arith.constant 0 : i32
    %122 = tpu.memref_slice %arg10[%c6_i32_85, %c0_i32_86] : memref<8x32xf32, #tpu.memory_space<vmem>> -> memref<1x32xf32, #tpu.memory_space<vmem>>
    %123 = tpu.memref_slice %arg11[%c0_i32_83] : memref<1x!tpu.dma_semaphore, #tpu.memory_space<semaphore_mem>> -> memref<1x!tpu.dma_semaphore, #tpu.memory_space<semaphore_mem>>
    %124 = tpu.memref_squeeze %123 : memref<1x!tpu.dma_semaphore, #tpu.memory_space<semaphore_mem>> -> memref<!tpu.dma_semaphore, #tpu.memory_space<semaphore_mem>>
    tpu.wait_dma2 semaphore(%124 : memref<!tpu.dma_semaphore, #tpu.memory_space<semaphore_mem>>) src(%121 : memref<1x32xf32, #tpu.memory_space<any>>) dst(%122 : memref<1x32xf32, #tpu.memory_space<vmem>>)
    %c0_i32_87 = arith.constant 0 : i32
    %c0_i32_88 = arith.constant 0 : i32
    %125 = tpu.memref_slice %arg3[%70, %c0_i32_88] : memref<64x32xf32, #tpu.memory_space<any>> -> memref<1x32xf32, #tpu.memory_space<any>>
    %c7_i32_89 = arith.constant 7 : i32
    %c0_i32_90 = arith.constant 0 : i32
    %126 = tpu.memref_slice %arg10[%c7_i32_89, %c0_i32_90] : memref<8x32xf32, #tpu.memory_space<vmem>> -> memref<1x32xf32, #tpu.memory_space<vmem>>
    %127 = tpu.memref_slice %arg11[%c0_i32_87] : memref<1x!tpu.dma_semaphore, #tpu.memory_space<semaphore_mem>> -> memref<1x!tpu.dma_semaphore, #tpu.memory_space<semaphore_mem>>
    %128 = tpu.memref_squeeze %127 : memref<1x!tpu.dma_semaphore, #tpu.memory_space<semaphore_mem>> -> memref<!tpu.dma_semaphore, #tpu.memory_space<semaphore_mem>>
    tpu.wait_dma2 semaphore(%128 : memref<!tpu.dma_semaphore, #tpu.memory_space<semaphore_mem>>) src(%125 : memref<1x32xf32, #tpu.memory_space<any>>) dst(%126 : memref<1x32xf32, #tpu.memory_space<vmem>>)
    %c0_91 = arith.constant 0 : index
    %c0_92 = arith.constant 0 : index
    %129 = vector.load %arg10[%c0_91, %c0_92] : memref<8x32xf32, #tpu.memory_space<vmem>>, vector<8x32xf32>
    %130 = arith.addf %96, %129 : vector<8x32xf32>
    %cst_93 = arith.constant dense<0.000000e+00> : vector<8xf32>
    %131 = vector.multi_reduction <add>, %130, %cst_93 [1] : vector<8x32xf32> to vector<8xf32>
    %132 = vector.shape_cast %131 : vector<8xf32> to vector<8x1xf32>
    %cst_94 = arith.constant 3.200000e+01 : f32
    %133 = vector.broadcast %cst_94 : f32 to vector<8x1xf32>
    %134 = arith.divf %132, %133 : vector<8x1xf32>
    %135 = vector.broadcast %134 : vector<8x1xf32> to vector<8x32xf32>
    %136 = arith.subf %130, %135 : vector<8x32xf32>
    %137 = arith.mulf %136, %136 : vector<8x32xf32>
    %cst_95 = arith.constant dense<0.000000e+00> : vector<8xf32>
    %138 = vector.multi_reduction <add>, %137, %cst_95 [1] : vector<8x32xf32> to vector<8xf32>
    %139 = vector.shape_cast %138 : vector<8xf32> to vector<8x1xf32>
    %cst_96 = arith.constant 3.200000e+01 : f32
    %140 = vector.broadcast %cst_96 : f32 to vector<8x1xf32>
    %141 = arith.divf %139, %140 : vector<8x1xf32>
    %c0_97 = arith.constant 0 : index
    %c0_98 = arith.constant 0 : index
    %142 = vector.load %arg6[%c0_97, %c0_98] : memref<1x32xf32, #tpu.memory_space<vmem>>, vector<1x32xf32>
    %cst_99 = arith.constant 9.99999996E-13 : f32
    %143 = vector.broadcast %cst_99 : f32 to vector<8x1xf32>
    %144 = arith.addf %141, %143 : vector<8x1xf32>
    %145 = math.rsqrt %144 : vector<8x1xf32>
    %146 = vector.broadcast %145 : vector<8x1xf32> to vector<8x32xf32>
    %147 = arith.mulf %136, %146 : vector<8x32xf32>
    %148 = vector.broadcast %142 : vector<1x32xf32> to vector<8x32xf32>
    %149 = arith.mulf %148, %147 : vector<8x32xf32>
    %c0_100 = arith.constant 0 : index
    %c0_101 = arith.constant 0 : index
    %150 = vector.load %arg7[%c0_100, %c0_101] : memref<1x32xf32, #tpu.memory_space<vmem>>, vector<1x32xf32>
    %151 = vector.broadcast %150 : vector<1x32xf32> to vector<8x32xf32>
    %152 = arith.addf %149, %151 : vector<8x32xf32>
    %c0_102 = arith.constant 0 : index
    %c0_103 = arith.constant 0 : index
    %153 = vector.load %arg9[%c0_102, %c0_103] : memref<8x32xf32, #tpu.memory_space<vmem>>, vector<8x32xf32>
    tpu.vector_store %arg9[%c0_102, %c0_103], %152 {strides = array<i32>} : memref<8x32xf32, #tpu.memory_space<vmem>>, vector<8x32xf32>,
    return
  }
  func.func @transform_1(%arg0: i32, %arg1: i32, %arg2: memref<16xi32, #tpu.memory_space<smem>>) -> (i32, i32) {
    %c0_i32 = arith.constant 0 : i32
    %c0_i32_0 = arith.constant 0 : i32
    return %arg1, %c0_i32 : i32, i32
  }
  func.func @transform_2(%arg0: i32, %arg1: i32, %arg2: memref<16xi32, #tpu.memory_space<smem>>) -> (i32, i32) {
    %c0_i32 = arith.constant 0 : i32
    %c0_i32_0 = arith.constant 0 : i32
    %c0_i32_1 = arith.constant 0 : i32
    return %c0_i32, %c0_i32_0 : i32, i32
  }
  func.func @transform_3(%arg0: i32, %arg1: i32, %arg2: memref<16xi32, #tpu.memory_space<smem>>) -> (i32, i32) {
    %c0_i32 = arith.constant 0 : i32
    %c0_i32_0 = arith.constant 0 : i32
    %c0_i32_1 = arith.constant 0 : i32
    return %c0_i32, %c0_i32_0 : i32, i32
  }
  func.func @transform_4(%arg0: i32, %arg1: i32, %arg2: memref<16xi32, #tpu.memory_space<smem>>) -> (i32, i32) {
    %c0_i32 = arith.constant 0 : i32
    %c0_i32_0 = arith.constant 0 : i32
    %c0_i32_1 = arith.constant 0 : i32
    return %c0_i32, %c0_i32_0 : i32, i32
  }
  func.func @transform_5(%arg0: i32, %arg1: i32, %arg2: memref<16xi32, #tpu.memory_space<smem>>) -> (i32, i32) {
    %c1_i32 = arith.constant 1 : i32
    %0 = arith.muli %arg0, %c1_i32 : i32
    %1 = arith.addi %0, %arg1 : i32
    %c0_i32 = arith.constant 0 : i32
    %c0_i32_0 = arith.constant 0 : i32
    return %1, %c0_i32 : i32, i32
  }
  func.func @transform_6(%arg0: i32, %arg1: i32, %arg2: memref<16xi32, #tpu.memory_space<smem>>) -> (i32, i32) {
    %c1_i32 = arith.constant 1 : i32
    %0 = arith.muli %arg0, %c1_i32 : i32
    %1 = arith.addi %0, %arg1 : i32
    %c0_i32 = arith.constant 0 : i32
    %c0_i32_0 = arith.constant 0 : i32
    return %1, %c0_i32 : i32, i32
  }
}

</mosaic_0001>

<bundles_post_ra>
// kernel: tpu_custom_call.1
= control target key start
LH: loop header
LB: loop body
LE: loop exit
PB: predicated region body
PF: predicated region fallthrough
CT: control target
= control target key end

     0   :  { %s1422_s0 = inlined_call_operand.vmem [shape: s32[16], index: 0, kind: input, shape index: {}]   ;;  %s1423_s1 = inlined_call_operand.vmem [shape: f32[64,32], index: 1, kind: input, shape index: {}]   ;;  %s1424_s2 = inlined_call_operand.vmem [shape: f32[16,32], index: 2, kind: input, shape index: {}]   ;;  %s1425_s3 = inlined_call_operand.vmem [shape: f32[2,32], index: 3, kind: input, shape index: {}]   ;;  %s1426_s4 = inlined_call_operand.vmem [shape: f32[1,32], index: 4, kind: input, shape index: {}]   ;;  %s1427_s5 = inlined_call_operand.vmem [shape: f32[1,32], index: 5, kind: input, shape index: {}]   ;;  %s1428_s6 = inlined_call_operand.vmem [shape: s32[16,1], index: 6, kind: input, shape index: {}]   ;;  %s1429_s7 = inlined_call_operand.hbm [shape: f32[16,32], index: 7, kind: output, shape index: {}]  }
   0x1   :  { %s12_s26 = sshll.u32 %s1422_s0, 4  ;;  %s13_s26 = int_to_ptr.vmem [resolvable:$true] %s12_s26 }
   0x2   :  { %s1115_s27 = scalar_lea.vmem %s13_s26, 16  ;;  %p1120_p1 = scmp.lt.s32.totalorder %s13_s26, %s13_s26 }
   0x3   :  { %p1116_p0 = scmp.ne.s32.totalorder %s13_s26, %s1115_s27  ;;  %p1121_p2 = scmp.lt.s32.totalorder %s1115_s27, %s1115_s27 }
   0x5   :  { %p1122_p3 = por %p1121_p2, %p1120_p1 }
   0x7   :  { %p1123_p4 = pnand %p1122_p3, %p1116_p0 }
   0x9   :  { %1126 = shalt.err (!%p1123_p4)  }
   0xa   :  { %s1209_s28 = smov [#allocation5]  }
   0xb   :  { %15 = dma.vmem_to_smem %s13_s26, 16, %s1209_s28, [#allocation4] }
   0xc   :  { %1177 = dma.done.wait [#allocation4], 16 }
   0xd   :  { %1178 = vsyncadd [#allocation4], 4294967280 }
   0xe   :  { %17 = sfence }
   0xf   :  { %18 = vsyncpa [#allocation7], 0 }
  0x10   :  { %20 = vsyncpa [#allocation7 + $0x1], 0  ;;  %s1256_s29 = smov 0   ;;  %s1258_s30 = smov 0  }
  0x11   :  { %s1260_s0 = smov 0   ;;  %s1262_s8 = smov 0  }
  0x12   :  { %s1264_s9 = smov 0   ;;  %s1266_s10 = smov 0  }
  0x13 LB: > { %s980_s11 = sadd.s32 4294967295, %s1207_s10   ;;  %s981_s12 = sadd.s32 4294967294, %s1207_s10   ;;  %s1207_s10 = sphi %s1266_s10, %s26_s10   ;;  %s1203_s9 = sphi %s1264_s9, %s1436_s9   ;;  %s1199_s8 = sphi %s1262_s8, %s1435_s8   ;;  %s1195_s0 = sphi %s1260_s0, %s1434_s0   ;;  %s1191_s30 = sphi %s1258_s30, %s1433_s30   ;;  %s1187_s29 = sphi %s1256_s29, %s1432_s29  }
  0x14   : > { %s38_s13 = sadd.s32 1, %s1203_s9  ;;  %s164_s14 = sadd.s32 1, %s1195_s0 }
  0x15   : > { %p40_p5 = scmp.ge.s32.totalorder %s38_s13, 2  ;;  %p174_p6 = scmp.ne.s32.totalorder %s1195_s0, %s1191_s30 }
  0x16   : > { %p175_p7 = scmp.eq.s32.totalorder %s980_s11, 1  ;;  %p180_p8 = scmp.ne.s32.totalorder %s1191_s30, %s1187_s29 }
  0x17   : > { %s1438_s13 = smov (%p40_p5, %s38_s13), 0  ;;  %p181_p10 = scmp.eq.s32.totalorder %s981_s12, 1 }
  0x18   : > { %p1296_p9 = por %p175_p7, %p174_p6  ;;  %s161_s16 = ssub.s32 %s1203_s9, %s1438_s13 }
  0x19   : > { %p985_p11 = scmp.ge.s32.totalorder %s1207_s10, 1  ;;  %p162_p12 = scmp.eq.s32.totalorder %s161_s16, 0 }
  0x1a   : > { %p1303_p13 = por %p181_p10, %p180_p8  ;;  %p224_p0 = scmp.lt.s32.totalorder %s1207_s10, 3 }
  0x1b   : > { %s1309_s18 = scalar_select %p162_p12, %s1195_s0, %s164_s14  }
  0x1c   : > { %p225_p1 = pnand %p985_p11, %p224_p0 }
  0x1d   : > { %s253_s19 = sand.u32 (!%p225_p1), 1, %s1191_s30   ;;  %p261_p2 = scmp.lt.s32.totalorder (!%p225_p1), %s1199_s8, 1 }
  0x1e   : > { %228 = sbr.rel (%p225_p1) target bundleno = 601 (0x259), region = 40  ;;  %s1315_s20 = sshll.u32 (!%p225_p1), %s253_s19, 3 }
  0x1f   : > { %s1318_s21 = sshll.u32 (!%p225_p1), %s1199_s8, 3  ;;  %s255_s14 = scalar_lea.vmem (!%p225_p1), [#allocation6], %s1315_s20 }
  0x20   : > { %s270_s22 = sld [smem:[#allocation5 + %s1318_s21]] (!%p225_p1) }
  0x23   : > { %s262_s23 = scalar_select %p261_p2, %s1199_s8, 1 }
  0x25   : > { %s987_s24 = sshll.u32 %s262_s23, 3 }
  0x26   : > { %s1325_s27 = scalar_lea.vmem %s1428_s6, %s987_s24  ;;  %p271_p3 = scmp.gt.s32.totalorder %s270_s22, 0 }
  0x27   : > { %p989_p4 = scmp.lt.s32.totalorder %s270_s22, 63 }
  0x28   : > { %s1440_s22 = smov (!%p271_p3, %s270_s22), 0 }
  0x29   : > { %s1442_s22 = smov (!%p989_p4, %s1440_s22), 63 }
  0x2a   : > { %s275_s12 = scalar_lea.vmem %s1423_s1, %s1442_s22 }
  0x2b   : > { %v294_v0 = vld [vmem:[%s275_s12] sm:$0x1] }
  0x2c   : > { %295 = vst [vmem:[#allocation2] sm:$0x1] %v294_v0 }
  0x2d   : > { %321 = vsyncadd [#allocation3], 16  ;;  %s322_s16 = sadd.s32 1, %s1318_s21 }
  0x2e   : > { %s323_s23 = sld [smem:[#allocation5 + %s322_s16]] }
  0x34   : > { %p324_p5 = scmp.gt.s32.totalorder %s323_s23, 0  ;;  %p994_p6 = scmp.lt.s32.totalorder %s323_s23, 63 }
  0x36   : > { %s1444_s23 = smov (!%p324_p5, %s323_s23), 0 }
  0x37   : > { %s1446_s23 = smov (!%p994_p6, %s1444_s23), 63 }
  0x38   : > { %s328_s26 = scalar_lea.vmem %s1423_s1, %s1446_s23 }
  0x39   : > { %v348_v1 = vld [vmem:[%s328_s26] sm:$0x1] }
  0x3a   : > { %349 = vst [vmem:[#allocation2 + $0x1] sm:$0x1] %v348_v1 }
  0x3b   : > { %375 = vsyncadd [#allocation3], 16  ;;  %s376_s22 = sadd.s32 2, %s1318_s21 }
  0x3c   : > { %s377_s28 = sld [smem:[#allocation5 + %s376_s22]] }
  0x42   : > { %p378_p7 = scmp.gt.s32.totalorder %s377_s28, 0  ;;  %p999_p8 = scmp.lt.s32.totalorder %s377_s28, 63 }
  0x44   : > { %s1448_s28 = smov (!%p378_p7, %s377_s28), 0 }
  0x45   : > { %s1450_s28 = smov (!%p999_p8, %s1448_s28), 63 }
  0x46   : > { %s382_s16 = scalar_lea.vmem %s1423_s1, %s1450_s28 }
  0x47   : > { %v402_v2 = vld [vmem:[%s382_s16] sm:$0x1] }
  0x48   : > { %403 = vst [vmem:[#allocation2 + $0x2] sm:$0x1] %v402_v2 }
  0x49   : > { %429 = vsyncadd [#allocation3], 16  ;;  %s430_s24 = sadd.s32 3, %s1318_s21 }
  0x4a   : > { %s431_s23 = sld [smem:[#allocation5 + %s430_s24]] }
  0x50   : > { %p432_p10 = scmp.gt.s32.totalorder %s431_s23, 0  ;;  %p1004_p11 = scmp.lt.s32.totalorder %s431_s23, 63 }
  0x52   : > { %s1452_s23 = smov (!%p432_p10, %s431_s23), 0 }
  0x53   : > { %s1454_s23 = smov (!%p1004_p11, %s1452_s23), 63 }
  0x54   : > { %s436_s22 = scalar_lea.vmem %s1423_s1, %s1454_s23 }
  0x55   : > { %v456_v3 = vld [vmem:[%s436_s22] sm:$0x1] }
  0x56   : > { %457 = vst [vmem:[#allocation2 + $0x3] sm:$0x1] %v456_v3 }
  0x57   : > { %483 = vsyncadd [#allocation3], 16  ;;  %s484_s11 = sadd.s32 4, %s1318_s21 }
  0x58   : > { %s485_s28 = sld [smem:[#allocation5 + %s484_s11]] }
  0x5e   : > { %p486_p12 = scmp.gt.s32.totalorder %s485_s28, 0  ;;  %p1009_p0 = scmp.lt.s32.totalorder %s485_s28, 63 }
  0x60   : > { %s1456_s28 = smov (!%p486_p12, %s485_s28), 0 }
  0x61   : > { %s1458_s28 = smov (!%p1009_p0, %s1456_s28), 63 }
  0x62   : > { %s490_s24 = scalar_lea.vmem %s1423_s1, %s1458_s28 }
  0x63   : > { %v510_v4 = vld [vmem:[%s490_s24] sm:$0x1] }
  0x64   : > { %511 = vst [vmem:[#allocation2 + $0x4] sm:$0x1] %v510_v4 }
  0x65   : > { %537 = vsyncadd [#allocation3], 16  ;;  %s538_s25 = sadd.s32 5, %s1318_s21 }
  0x66   : > { %s539_s23 = sld [smem:[#allocation5 + %s538_s25]] }
  0x6c   : > { %p540_p1 = scmp.gt.s32.totalorder %s539_s23, 0  ;;  %p1014_p2 = scmp.lt.s32.totalorder %s539_s23, 63 }
  0x6e   : > { %s1460_s23 = smov (!%p540_p1, %s539_s23), 0 }
  0x6f   : > { %s1462_s23 = smov (!%p1014_p2, %s1460_s23), 63 }
  0x70   : > { %s544_s11 = scalar_lea.vmem %s1423_s1, %s1462_s23 }
  0x71   : > { %v564_v5 = vld [vmem:[%s544_s11] sm:$0x1] }
  0x72   : > { %565 = vst [vmem:[#allocation2 + $0x5] sm:$0x1] %v564_v5 }
  0x73   : > { %591 = vsyncadd [#allocation3], 16  ;;  %s592_s12 = sadd.s32 6, %s1318_s21 }
  0x74   : > { %s593_s28 = sld [smem:[#allocation5 + %s592_s12]] }
  0x7a   : > { %p594_p3 = scmp.gt.s32.totalorder %s593_s28, 0  ;;  %p1019_p4 = scmp.lt.s32.totalorder %s593_s28, 63 }
  0x7c   : > { %s1464_s28 = smov (!%p594_p3, %s593_s28), 0 }
  0x7d   : > { %s1466_s28 = smov (!%p1019_p4, %s1464_s28), 63 }
  0x7e   : > { %s598_s25 = scalar_lea.vmem %s1423_s1, %s1466_s28 }
  0x7f   : > { %v618_v6 = vld [vmem:[%s598_s25] sm:$0x1] }
  0x80   : > { %619 = vst [vmem:[#allocation2 + $0x6] sm:$0x1] %v618_v6 }
  0x81   : > { %645 = vsyncadd [#allocation3], 16  ;;  %s646_s23 = sadd.s32 7, %s1318_s21  ;;  %v701_v8 = vld [vmem:[%s1325_s27] sm:$0xff]  ;;  %v1210_v9 = vmov 0  }
  0x82   : > { %s647_s26 = sld [smem:[#allocation5 + %s646_s23]]  ;;  %1112 = vset.pattern.permute.xlu0 %v1210_v9  ;;  %vm703_vm0 = vcmp.eq.s32.totalorder %v701_v8, 0  ;;  %vm717_vm1 = vcmp.eq.s32.totalorder %v701_v8, 1 }
  0x88   : > { %p648_p5 = scmp.gt.s32.totalorder %s647_s26, 0  ;;  %p1024_p6 = scmp.lt.s32.totalorder %s647_s26, 63 }
  0x8a   : > { %s1468_s26 = smov (!%p648_p5, %s647_s26), 0 }
  0x8b   : > { %s1470_s26 = smov (!%p1024_p6, %s1468_s26), 63 }
  0x8c   : > { %s652_s12 = scalar_lea.vmem %s1423_s1, %s1470_s26 }
  0x8d   : > { %v672_v7 = vld [vmem:[%s652_s12] sm:$0x1] }
  0x8e   : > { %673 = vst [vmem:[#allocation2 + $0x7] sm:$0x1] %v672_v7 }
  0x8f   : > { %699 = vsyncadd [#allocation3], 16  ;;  %v1211_v10 = vmov 0.0   ;;  %v1029_v13 = vld [vmem:[%s1425_s3] ss:$0 sm:$0xff] }
  0x90   : > { %v704_v11 = vsel %vm703_vm0, 1.0, %v1211_v10  ;;  %v718_v12 = vsel %vm717_vm1, 1.0, %v1211_v10  ;;  %v700_v16 = vld [vmem:[%s1424_s2] sm:$0xff] }
  0x91   : > { %707 = vperm.xlu0 %1112, %v704_v11   ;;  %v1030_v17 = vld [vmem:[%s1425_s3 + $0x1] ss:$0 sm:$0xff] }
  0x95   : > { %721 = vperm.xlu0 %1112, %v718_v12  }
 0x10c   : > { %v708_v14 = vpop.permute.xlu0 %707 }
 0x10d   : > { %v714_v15 = vmul.f32 %v1029_v13, %v708_v14 }
 0x10f   : > { %v715_v19 = vadd.f32 %v714_v15, %v700_v16 }
 0x110   : > { %v722_v18 = vpop.permute.xlu0 %721 }
 0x111   : > { %v728_v20 = vmul.f32 %v1030_v17, %v722_v18 }
 0x113   : > { %v729_v21 = vadd.f32 %v728_v20, %v715_v19 }
 0x114   : > { %1179 = dma.done.wait [#allocation3], 128 }
 0x115   : > { %1180 = vsyncadd [#allocation3], 4294967168  ;;  %v747_v22 = vld [vmem:[#allocation2] sm:$0xff]  ;;  %vm749_vm2 = vcmask 261120   ;;  %s1034_s12 = sshll.u32 %s1199_s8, 7  ;;  %s796_s21 = sshll.u32 %s255_s14, 4  ;;  %s797_s21 = int_to_ptr.vmem [resolvable:$true] %s796_s21 }
 0x116   : > { %v748_v23 = vadd.f32 %v747_v22, %v729_v21  ;;  %v1031_v34 = vld [vmem:[%s1426_s4] ss:$0 sm:$0xff]  ;;  %s794_s24 = scalar_lea.hbm %s1429_s7, %s1034_s12  ;;  %s782_s27 = scalar_lea.sflag [#allocation7], %s253_s19 }
 0x117   : > { %v1032_v36 = vld [vmem:[%s1427_s5] ss:$0 sm:$0xff]  ;;  %s1127_s25 = scalar_lea.vmem %s797_s21, 128  ;;  %s1212_s8 = smov [#allocation6]  }
 0x118   : > { %v750_v24 = vsel %vm749_vm2, %v748_v23, 0.0  ;;  %p1128_p7 = scmp.ne.s32.totalorder %s797_s21, %s1127_s25  ;;  %s1131_s23 = sshll.u32 %s1212_s8, 4  ;;  %s1132_s23 = int_to_ptr.vmem [resolvable:$false] %s1131_s23 }
 0x119   : > { %751 = vadd.xlane.f32.xlu0 %v750_v24  ;;  %s1133_s26 = scalar_lea.vmem %s1132_s23, 256  ;;  %p1134_p11 = scmp.lt.s32.totalorder %s797_s21, %s1132_s23 }
 0x11a   : > { %p1129_p8 = pnand %p1128_p7, %p1296_p9  ;;  %p1135_p12 = scmp.lt.s32.totalorder %s1133_s26, %s1127_s25 }
 0x11c   : > { %p1130_p10 = pneg %p1129_p8  ;;  %p1136_p0 = por %p1135_p12, %p1134_p11 }
 0x11e   : > { %p1137_p1 = pnand %p1136_p0, %p1130_p10 }
 0x1a2   : > { %v752_v25 = vpop.xlane.xlu0 %751 }
 0x1a3   : > { %v754_v26 = vmul.f32 0.03125, %v752_v25 }
 0x1a5   : > { %v755_v27 = vsub.f32 %v748_v23, %v754_v26 }
 0x1a7   : > { %v756_v28 = vmul.f32 %v755_v27, %v755_v27 }
 0x1a9   : > { %v757_v29 = vsel %vm749_vm2, %v756_v28, 0.0 }
 0x1aa   : > { %758 = vadd.xlane.f32.xlu0 %v757_v29 }
 0x233   : > { %v759_v30 = vpop.xlane.xlu0 %758 }
 0x234   : > { %v760_v31 = vmul.f32 0.03125, %v759_v30 }
 0x236   : > { %v762_v32 = vadd.f32 1e-12, %v760_v31 }
 0x238   : > { %1113 = vrsqrt.f32 %v762_v32 }
 0x245   : > { %v1114_v33 = vpop.eup %1113 }
 0x246   : > { %v764_v35 = vmul.f32 %v1114_v33, %v755_v27 }
 0x248   : > { %v771_v37 = vmul.f32 %v1031_v34, %v764_v35 }
 0x24a   : > { %v779_v38 = vadd.f32 %v1032_v36, %v771_v37 }
 0x24c   : > { %780 = vst.msk [vmem:[%s255_s14] sm:$0xff] %vm749_vm2, %v779_v38 }
 0x24d   : > { %1140 = shalt.err (!%p1137_p1)
}
 0x24e   : > { %s1141_s22 = scalar_lea.hbm %s794_s24, 128  ;;  %s1145_s14 = scalar_lea.hbm %s1429_s7, 256 }
 0x24f   : > { %p1142_p2 = scmp.ne.s32.totalorder %s794_s24, %s1141_s22  ;;  %p1146_p5 = scmp.lt.s32.totalorder %s794_s24, %s1429_s7 }
 0x250   : > { %p1147_p6 = scmp.lt.s32.totalorder %s1145_s14, %s1141_s22 }
 0x251   : > { %p1143_p3 = pnand %p1142_p2, %p1296_p9 }
 0x252   : > { %p1148_p7 = por %p1147_p6, %p1146_p5 }
 0x253   : > { %p1144_p4 = pneg %p1143_p3 }
 0x255   : > { %p1149_p8 = pnand %p1148_p7, %p1144_p4 }
 0x257   : > { %1152 = shalt.err (!%p1149_p8)
}
 0x258   : > { %1054 = dma.vmem_to_hbm [thread:$0]  (%p1296_p9), %s797_s21, 128, %s794_s24, %s782_s27  }
 0x259 PF: > { %p1060_p10 = scmp.ge.s32.totalorder %s1207_s10, 2  ;;  %s808_s28 = sand.u32 1, %s1187_s29  }
 0x25a   : > { %s809_s16 = scalar_lea.sflag [#allocation7], %s808_s28 }
 0x25b   : > { %p1057_p11 = pnand %p1060_p10, %p1303_p13 }
 0x25d   : > { %p1058_p12 = pneg %p1057_p11 }
 0x25f   : > { %1182 = dma.done.wait (%p1058_p12), %s809_s16, 128  }
 0x260   : > { %1184 = vsyncadd (%p1058_p12), %s809_s16, 4294967168  ;;  %s26_s10 = sadd.s32 1, %s1207_s10   ;;  %s1432_s29 = smov %s1191_s30 }
 0x261   : > { %p23_p0 = scmp.ge.s32.totalorder %s26_s10, 4   ;;  %s1433_s30 = smov %s1195_s0 }
 0x262   : > { %s1434_s0 = smov %s1309_s18  ;;  %s1435_s8 = smov %s1203_s9 }
 0x263   : > { %s1436_s9 = smov %s1438_s13  ;;  %25 = sbr.rel (!%p23_p0) target bundleno = 19 (0x13), region = 413 }
 0x268   :  { %814 = vsyncpa [#allocation7], 1 }
 0x269   :  { %816 = vsyncpa [#allocation7 + $0x1], 1 }
 0x26a   :  { %817 = vsyncmov [#allocation3] }
 0x26d   :  { %s818_s15 = vpop.sfrf %817 }
 0x26e   :  { %p1037_p9 = scmp.ne.s32.totalorder %s818_s15, 0 }
 0x270   :  { %822 = shalt.err (%p1037_p9)  }

</bundles_post_ra>
